<compile_context>
chip_gen: v6e
topology: v6e:2x2x1
jax: 0.10.0
libtpu: 0.0.40
codegen_flags: <defaults>
</compile_context>

<pallas_src>
import functools

import jax
import jax.numpy as jnp
from jax.experimental import pallas as pl
from jax.experimental.pallas import tpu as pltpu


def _patch_embed_kernel(xp_ref, w_ref, p_ref, o_ref, *, eps):
    # xp_ref: (K, TN)   w_ref: (D, K)   p_ref: (3, D, 1) = [bias, gamma, beta]
    # o_ref:  (D, TN)
    # Conv-as-matmul on the MXU, f32 accumulation; patch axis on lanes.
    y = jnp.dot(w_ref[...], xp_ref[...], preferred_element_type=jnp.float32)
    y = y + p_ref[0]                                      # conv bias, f32

    # LayerNorm over the embedding dim D (sublane axis), f32 throughout.
    # One-pass moments: var = E[y^2] - E[y]^2 (no `cent` temp / extra pass).
    mean = jnp.mean(y, axis=0, keepdims=True)             # (1, TN)
    var = jnp.mean(y * y, axis=0, keepdims=True) - mean * mean
    inv = jax.lax.rsqrt(jnp.maximum(var, 0.0) + eps)      # EUP rsqrt
    o_ref[...] = ((y - mean) * inv * p_ref[1] + p_ref[2]).astype(o_ref.dtype)


def _pick_tile_n(N, cap=2048):
    """Tile size along the patch axis (lanes).

    Full N when it fits (single lane-dense-as-possible tile, no tail), else the
    largest 128-multiple divisor of N (exact tiling, unmasked vst), else a
    128-multiple with a masked (still correct) tail tile.
    """
    if N <= cap:
        return N
    for t in range(cap - cap % 128, 0, -128):
        if N % t == 0:
            return t
    return min(cap - cap % 128, 1024)


def _round_up(v, m):
    return -(-v // m) * m


def patch_embed_forward(x, conv_w, conv_b, ln_gamma, ln_beta, *, patch_size,
                        eps=1e-5, compute_dtype=jnp.bfloat16, out_dtype=None):
    """x: (B, C, H, W). conv_w: (D, C, ph, pw). Returns (B, D, H/p, W/p).

    out_dtype defaults to x.dtype; on v5e large-D configs that flip to
    compute/write-bound, passing out_dtype=jnp.bfloat16 halves output traffic.
    """
    B, C, H, W = x.shape
    D = conv_w.shape[0]
    ph, pw = patch_size
    assert H % ph == 0 and W % pw == 0, "image must be divisible by patch size"
    Hp, Wp = H // ph, W // pw
    N = Hp * Wp
    K = C * ph * pw
    out_dtype = x.dtype if out_dtype is None else out_dtype

    # --- input glue: gather non-overlapping patches into (B, K, N) -----------
    # k = (c, i, j) channel-major (matches Conv2d weight (D, C, ph, pw)),
    # n = hp*Wp + wp (matches flatten(2)).  Single XLA pass (transpose fused
    # with the bf16 cast under jit).  See header for why it is not in-kernel.
    xp = (x.reshape(B, C, Hp, ph, Wp, pw)
            .transpose(0, 1, 3, 5, 2, 4)
            .reshape(B, K, N)).astype(compute_dtype)

    w_dk = conv_w.reshape(D, K).astype(compute_dtype)              # (D, K)
    # bias / gamma / beta packed into one resident (3, D, 1) f32 input.
    params = jnp.stack([conv_b.reshape(D, 1),
                        ln_gamma.reshape(D, 1),
                        ln_beta.reshape(D, 1)]).astype(jnp.float32)

    # --- tiling: full D and K per step (LN needs full D), tile the patch axis
    TN = _pick_tile_n(N)
    n_tiles = pl.cdiv(N, TN)
    grid = (B, n_tiles)

    # Deeper activation buffering only when there are enough N-steps to hide
    # DMA behind (matters on v5e's ~0.82 TB/s HBM; free in its 128 MiB VMEM).
    act_index_map = lambda b, n: (b, 0, n)
    if n_tiles >= 3:
        act_spec = pl.BlockSpec((None, K, TN), act_index_map,
                                pipeline_mode=pl.Buffered(3))
        n_act_bufs = 3
    else:
        act_spec = pl.BlockSpec((None, K, TN), act_index_map)
        n_act_bufs = 2

    act_isz = jnp.dtype(compute_dtype).itemsize
    out_isz = jnp.dtype(out_dtype).itemsize

    # Right-sized VMEM ask: padded tile footprint + headroom (not 64 MiB,
    # which is v7x's entire physical VMEM).
    act_buf = _round_up(K, 8) * _round_up(TN, 128) * act_isz
    out_buf = _round_up(D, 8) * _round_up(TN, 128) * out_isz
    w_buf = _round_up(D, 8) * _round_up(K, 128) * act_isz
    p_buf = 3 * _round_up(D, 8) * 128 * 4
    vmem_bytes = (n_act_bufs * act_buf + 2 * out_buf + 2 * w_buf + 2 * p_buf
                  + (2 << 20))
    vmem_limit = int(min(100 << 20, max(8 << 20, vmem_bytes)))

    cost = pl.CostEstimate(
        flops=2 * B * N * K * D,
        transcendentals=0,
        bytes_accessed=int(B * K * N * act_isz + D * K * act_isz
                           + 3 * D * 4 + B * D * N * out_isz),
    )

    out = pl.pallas_call(
        functools.partial(_patch_embed_kernel, eps=eps),
        out_shape=jax.ShapeDtypeStruct((B, D, N), out_dtype),
        grid_spec=pltpu.PrefetchScalarGridSpec(
            num_scalar_prefetch=0,
            grid=grid,
            in_specs=[
                # activations: one image's tile of TN patches, (K, TN) in-kernel
                act_spec,
                # weight and packed params stay resident (constant index maps)
                pl.BlockSpec((D, K), lambda b, n: (0, 0)),
                pl.BlockSpec((3, D, 1), lambda b, n: (0, 0, 0)),
            ],
            # lane-dense output, already laid out as (B, D, N)
            out_specs=pl.BlockSpec((None, D, TN), lambda b, n: (b, 0, n)),
        ),
        compiler_params=pltpu.CompilerParams(
            dimension_semantics=("parallel", "parallel"),
            vmem_limit_bytes=vmem_limit,
        ),
        cost_estimate=cost,
    )(xp, w_dk, params)

    # --- output glue: (B, D, N) -> (B, D, Hp, Wp) is a free reshape -----------
    return out.reshape(B, D, Hp, Wp)


def _reference(x, conv_w, conv_b, ln_gamma, ln_beta, *, patch_size, eps=1e-5):
    """Pure-JAX reference mirroring the PyTorch forward."""
    B, C, H, W = x.shape
    D = conv_w.shape[0]
    ph, pw = patch_size
    Hp, Wp = H // ph, W // pw
    xp = (x.reshape(B, C, Hp, ph, Wp, pw)
            .transpose(0, 2, 4, 1, 3, 5)
            .reshape(B, Hp * Wp, -1))
    y = xp @ conv_w.reshape(D, -1).T + conv_b            # (B, N, D)
    mean = y.mean(-1, keepdims=True)
    var = ((y - mean) ** 2).mean(-1, keepdims=True)
    yn = (y - mean) / jnp.sqrt(var + eps) * ln_gamma + ln_beta
    return yn.reshape(B, Hp, Wp, D).transpose(0, 3, 1, 2)


if __name__ == "__main__":
    # Small shapes consistent with the module: img_size=16, patch_size=4,
    # in_chans=4, embed_dim=32, batch=2.
    B, C, H, W = 2, 4, 16, 16
    patch = (4, 4)
    D = 32

    key = jax.random.PRNGKey(0)
    kx, kw, kb, kg, kbe = jax.random.split(key, 5)
    x = jax.random.normal(kx, (B, C, H, W), dtype=jnp.float32)
    conv_w = jax.random.normal(kw, (D, C, patch[0], patch[1]), dtype=jnp.float32) * 0.05
    conv_b = jax.random.normal(kb, (D,), dtype=jnp.float32) * 0.05
    ln_gamma = jnp.ones((D,), dtype=jnp.float32) + 0.1 * jax.random.normal(kg, (D,), dtype=jnp.float32)
    ln_beta = 0.1 * jax.random.normal(kbe, (D,), dtype=jnp.float32)

    ref = _reference(x, conv_w, conv_b, ln_gamma, ln_beta, patch_size=patch)

    # jit the whole wrapper so the patch-gather transpose and the dtype cast
    # fuse into a single XLA pass in front of the Pallas call.
    fwd_f32 = jax.jit(functools.partial(patch_embed_forward, patch_size=patch,
                                        compute_dtype=jnp.float32))
    fwd_bf16 = jax.jit(functools.partial(patch_embed_forward, patch_size=patch))

    # 1) Exact-semantics path (f32 MXU operands): tight tolerance vs f32 reference.
    out_f32 = jax.block_until_ready(fwd_f32(x, conv_w, conv_b, ln_gamma, ln_beta))
    assert out_f32.shape == (B, D, H // patch[0], W // patch[1]), out_f32.shape
    assert jnp.allclose(out_f32, ref, atol=1e-4, rtol=1e-4), \
        float(jnp.max(jnp.abs(out_f32 - ref)))

    # 2) Default fast path (bf16 MXU operands, f32 accumulation + LayerNorm):
    #    compare against a reference fed bf16-rounded operands.
    ref_bf16 = _reference(x.astype(jnp.bfloat16).astype(jnp.float32),
                          conv_w.astype(jnp.bfloat16).astype(jnp.float32),
                          conv_b, ln_gamma, ln_beta, patch_size=patch)
    out_bf16 = jax.block_until_ready(fwd_bf16(x, conv_w, conv_b, ln_gamma, ln_beta))
    assert out_bf16.shape == (B, D, H // patch[0], W // patch[1]), out_bf16.shape
    assert jnp.allclose(out_bf16, ref_bf16, atol=2e-3, rtol=2e-3), \
        float(jnp.max(jnp.abs(out_bf16 - ref_bf16)))

    print("KERNEL_OK")
</pallas_src>

<mosaic_0001>
module attributes {stable_mosaic.version = 11 : i64} {
  func.func @_patch_embed_kernel(%arg0: i32, %arg1: i32, %arg2: memref<1x64x16xf32, #tpu.memory_space<vmem>>, %arg3: memref<32x64xf32, #tpu.memory_space<vmem>>, %arg4: memref<3x32x1xf32, #tpu.memory_space<vmem>>, %arg5: memref<1x32x16xf32, #tpu.memory_space<vmem>>) attributes {dimension_semantics = [#tpu.dimension_semantics<parallel>, #tpu.dimension_semantics<parallel>], iteration_bounds = array<i64: 2, 1>, scalar_prefetch = 0 : i64, scratch_operands = 0 : i64, tpu.core_type = #tpu.core_type<tc>, window_params = [{transform_indices = @transform_0, window_bounds = array<i64: 1, 64, 16>}, {pipeline_mode = #tpu.pipeline_mode<synchronous>, transform_indices = @transform_1, window_bounds = array<i64: 32, 64>}, {pipeline_mode = #tpu.pipeline_mode<synchronous>, transform_indices = @transform_2, window_bounds = array<i64: 3, 32, 1>}, {transform_indices = @transform_3, window_bounds = array<i64: 1, 32, 16>}]} {
    %c0 = arith.constant 0 : index
    %c0_0 = arith.constant 0 : index
    %0 = vector.load %arg3[%c0, %c0_0] : memref<32x64xf32, #tpu.memory_space<vmem>>, vector<32x64xf32>
    %c0_1 = arith.constant 0 : index
    %c0_2 = arith.constant 0 : index
    %c0_3 = arith.constant 0 : index
    %1 = vector.load %arg2[%c0_1, %c0_2, %c0_3] : memref<1x64x16xf32, #tpu.memory_space<vmem>>, vector<1x64x16xf32>
    %2 = vector.shape_cast %1 : vector<1x64x16xf32> to vector<64x16xf32>
    %cst = arith.constant dense<0.000000e+00> : vector<32x16xf32>
    %3 = tpu.matmul %0, %2, %cst {dimension_numbers = #tpu.dot_dimension_numbers<[1], [0], [0], [1], [0, 0, 1, 1], [], []>} : vector<32x64xf32>, vector<64x16xf32>, vector<32x16xf32> -> vector<32x16xf32>
    %c0_4 = arith.constant 0 : index
    %c0_5 = arith.constant 0 : index
    %c0_6 = arith.constant 0 : index
    %4 = vector.load %arg4[%c0_4, %c0_5, %c0_6] : memref<3x32x1xf32, #tpu.memory_space<vmem>>, vector<1x32x1xf32>
    %5 = vector.shape_cast %4 : vector<1x32x1xf32> to vector<32x1xf32>
    %6 = vector.broadcast %5 : vector<32x1xf32> to vector<32x16xf32>
    %7 = arith.addf %3, %6 : vector<32x16xf32>
    %cst_7 = arith.constant dense<0.000000e+00> : vector<16xf32>
    %8 = vector.multi_reduction <add>, %7, %cst_7 [0] : vector<32x16xf32> to vector<16xf32>
    %9 = vector.shape_cast %8 : vector<16xf32> to vector<1x16xf32>
    %cst_8 = arith.constant 3.200000e+01 : f32
    %10 = vector.broadcast %cst_8 : f32 to vector<1x16xf32>
    %11 = arith.divf %9, %10 : vector<1x16xf32>
    %12 = arith.mulf %7, %7 : vector<32x16xf32>
    %cst_9 = arith.constant dense<0.000000e+00> : vector<16xf32>
    %13 = vector.multi_reduction <add>, %12, %cst_9 [0] : vector<32x16xf32> to vector<16xf32>
    %14 = vector.shape_cast %13 : vector<16xf32> to vector<1x16xf32>
    %cst_10 = arith.constant 3.200000e+01 : f32
    %15 = vector.broadcast %cst_10 : f32 to vector<1x16xf32>
    %16 = arith.divf %14, %15 : vector<1x16xf32>
    %17 = arith.mulf %11, %11 : vector<1x16xf32>
    %18 = arith.subf %16, %17 : vector<1x16xf32>
    %cst_11 = arith.constant 0.000000e+00 : f32
    %19 = vector.broadcast %cst_11 : f32 to vector<1x16xf32>
    %20 = arith.maximumf %18, %19 : vector<1x16xf32>
    %cst_12 = arith.constant 9.99999974E-6 : f32
    %21 = vector.broadcast %cst_12 : f32 to vector<1x16xf32>
    %22 = arith.addf %20, %21 : vector<1x16xf32>
    %23 = math.rsqrt %22 : vector<1x16xf32>
    %24 = vector.broadcast %11 : vector<1x16xf32> to vector<32x16xf32>
    %25 = arith.subf %7, %24 : vector<32x16xf32>
    %26 = vector.broadcast %23 : vector<1x16xf32> to vector<32x16xf32>
    %27 = arith.mulf %25, %26 : vector<32x16xf32>
    %c1 = arith.constant 1 : index
    %c0_13 = arith.constant 0 : index
    %c0_14 = arith.constant 0 : index
    %28 = vector.load %arg4[%c1, %c0_13, %c0_14] : memref<3x32x1xf32, #tpu.memory_space<vmem>>, vector<1x32x1xf32>
    %29 = vector.shape_cast %28 : vector<1x32x1xf32> to vector<32x1xf32>
    %30 = vector.broadcast %29 : vector<32x1xf32> to vector<32x16xf32>
    %31 = arith.mulf %27, %30 : vector<32x16xf32>
    %c2 = arith.constant 2 : index
    %c0_15 = arith.constant 0 : index
    %c0_16 = arith.constant 0 : index
    %32 = vector.load %arg4[%c2, %c0_15, %c0_16] : memref<3x32x1xf32, #tpu.memory_space<vmem>>, vector<1x32x1xf32>
    %33 = vector.shape_cast %32 : vector<1x32x1xf32> to vector<32x1xf32>
    %34 = vector.broadcast %33 : vector<32x1xf32> to vector<32x16xf32>
    %35 = arith.addf %31, %34 : vector<32x16xf32>
    %c0_17 = arith.constant 0 : index
    %c0_18 = arith.constant 0 : index
    %c0_19 = arith.constant 0 : index
    %36 = vector.load %arg5[%c0_17, %c0_18, %c0_19] : memref<1x32x16xf32, #tpu.memory_space<vmem>>, vector<1x32x16xf32>
    %37 = vector.shape_cast %36 : vector<1x32x16xf32> to vector<32x16xf32>
    %38 = vector.shape_cast %35 : vector<32x16xf32> to vector<1x32x16xf32>
    tpu.vector_store %arg5[%c0_17, %c0_18, %c0_19], %38 {strides = array<i32>} : memref<1x32x16xf32, #tpu.memory_space<vmem>>, vector<1x32x16xf32>,
    return
  }
  func.func @transform_0(%arg0: i32, %arg1: i32) -> (i32, i32, i32) {
    %c0_i32 = arith.constant 0 : i32
    %c0_i32_0 = arith.constant 0 : i32
    return %arg0, %c0_i32, %arg1 : i32, i32, i32
  }
  func.func @transform_1(%arg0: i32, %arg1: i32) -> (i32, i32) {
    %c0_i32 = arith.constant 0 : i32
    %c0_i32_0 = arith.constant 0 : i32
    %c0_i32_1 = arith.constant 0 : i32
    return %c0_i32, %c0_i32_0 : i32, i32
  }
  func.func @transform_2(%arg0: i32, %arg1: i32) -> (i32, i32, i32) {
    %c0_i32 = arith.constant 0 : i32
    %c0_i32_0 = arith.constant 0 : i32
    %c0_i32_1 = arith.constant 0 : i32
    %c0_i32_2 = arith.constant 0 : i32
    return %c0_i32, %c0_i32_0, %c0_i32_1 : i32, i32, i32
  }
  func.func @transform_3(%arg0: i32, %arg1: i32) -> (i32, i32, i32) {
    %c0_i32 = arith.constant 0 : i32
    %c0_i32_0 = arith.constant 0 : i32
    return %arg0, %c0_i32, %arg1 : i32, i32, i32
  }
}

</mosaic_0001>

<bundles_post_ra>
// kernel: patch_embed_forward.1
= control target key start
LH: loop header
LB: loop body
LE: loop exit
PB: predicated region body
PF: predicated region fallthrough
CT: control target
= control target key end

     0   :  { %s677_s12 = smov 0   ;;  %s679_s13 = smov 0   ;;  %s788_s0 = inlined_call_operand.vmem [shape: f32[2,64,16], index: 0, kind: input, shape index: {}]   ;;  %s789_s1 = inlined_call_operand.vmem [shape: f32[32,64], index: 1, kind: input, shape index: {}]   ;;  %s790_s2 = inlined_call_operand.vmem [shape: f32[3,32,1], index: 2, kind: input, shape index: {}]   ;;  %s791_s3 = inlined_call_operand.vmem [shape: f32[2,32,16], index: 3, kind: output, shape index: {}]  }
   0x1   :  { %s681_s14 = smov 0  }
   0x2 LB: > { %s25_s15 = sadd.s32 1, %s650_s13  ;;  %p532_p0 = scmp.ge.s32.totalorder %s654_s14, 1  ;;  %s654_s14 = sphi %s681_s14, %s13_s14   ;;  %s650_s13 = sphi %s679_s13, %s793_s13   ;;  %s646_s12 = sphi %s677_s12, %s792_s12  }
   0x3   : > { %p27_p1 = scmp.ge.s32.totalorder %s25_s15, 2  ;;  %p156_p2 = scmp.lt.s32.totalorder %s654_s14, 3 }
   0x5   : > { %s795_s15 = smov (%p27_p1, %s25_s15), 0  ;;  %p157_p3 = pnand %p532_p0, %p156_p2 }
   0x6   : > { %p186_p4 = scmp.lt.s32.totalorder (!%p157_p3), %s646_s12, 1 }
   0x7   : > { %160 = sbr.rel (%p157_p3) target bundleno = 280 (0x118), region = 32 }
   0xc   : > { %v202_v0 = vld [vmem:[%s789_s1] sm:$0xff]  ;;  %vm238_vm0 = vcmask 523264   ;;  %v204_v1 = vld [vmem:[%s789_s1 + $0x10] sm:$0xff]  ;;  %s797_s12 = smov (!%p186_p4, %s646_s12), 1  ;;  %v656_v4 = vmov 0   ;;  %v203_v13 = vld [vmem:[%s789_s1 + $0x8] sm:$0xff] }
   0xd   : > { %581 = vmatprep.mubr.msk.f32.mxu0 %vm238_vm0, %v202_v0  ;;  %584 = vmatprep.mubr.msk.f32.mxu1 %vm238_vm0, %v204_v1  ;;  %v214_v2 = vld [vmem:[%s790_s2] sm:$0xff]  ;;  %v216_v3 = vld [vmem:[%s790_s2 + $0x10] sm:$0xff]  ;;  %s551_s24 = sshll.u32 %s797_s12, 6  ;;  %v205_v14 = vld [vmem:[%s789_s1 + $0x18] sm:$0xff]  ;;  %vm336_vm1 = vcmask 130048   ;;  %s552_s29 = sshll.u32 %s797_s12, 5 }
   0xe   : > { %628 = vset.pattern.permute.xlu0 %v656_v4  ;;  %629 = vset.pattern.permute.xlu1 %v656_v4  ;;  %s715_s27 = scalar_lea.vmem %s788_s0, %s551_s24  ;;  %v215_v15 = vld [vmem:[%s790_s2 + $0x8] sm:$0xff]  ;;  %v217_v16 = vld [vmem:[%s790_s2 + $0x18] sm:$0xff]  ;;  %v541_v17 = vld [vmem:[%s790_s2 + $0x20] sm:$0xff]  ;;  %s201_s5 = scalar_lea.vmem %s791_s3, %s552_s29 }
   0xf   : > { %220 = vperm.xlu0 %628, %v214_v2   ;;  %230 = vperm.xlu1 %629, %v216_v3   ;;  %v213_v5 = vld [vmem:[%s715_s27 + $0x38] sm:$0xff]  ;;  %v212_v6 = vld [vmem:[%s715_s27 + $0x30] sm:$0xff]  ;;  %v211_v7 = vld [vmem:[%s715_s27 + $0x28] sm:$0xff] }
  0x10   : > { %565 = vmatprep.subr.mxu0 %v213_v5  ;;  %587 = vmatprep.subr.mxu1 %v213_v5  ;;  %v210_v8 = vld [vmem:[%s715_s27 + $0x20] sm:$0xff]  ;;  %v209_v9 = vld [vmem:[%s715_s27 + $0x18] sm:$0xff]  ;;  %v208_v10 = vld [vmem:[%s715_s27 + $0x10] sm:$0xff] }
  0x11   : > { %566 = vmatpush3.msra.mxu0 %v213_v5  ;;  %595 = vmatpush3.msra.mxu1 %v213_v5  ;;  %v207_v11 = vld [vmem:[%s715_s27 + $0x8] sm:$0xff]  ;;  %v206_v12 = vld [vmem:[%s715_s27] sm:$0xff]  ;;  %v543_v19 = vld [vmem:[%s790_s2 + $0x30] sm:$0xff] }
  0x12   : > { %567 = vmatprep.subr.mxu0 %v212_v6  ;;  %588 = vmatprep.subr.mxu1 %v212_v6  ;;  %v542_v18 = vld [vmem:[%s790_s2 + $0x28] sm:$0xff]  ;;  %v544_v20 = vld [vmem:[%s790_s2 + $0x38] sm:$0xff]  ;;  %v545_v21 = vld [vmem:[%s790_s2 + $0x40] sm:$0xff] }
  0x13   : > { %568 = vmatpush3.msra.mxu0 %v212_v6  ;;  %596 = vmatpush3.msra.mxu1 %v212_v6  ;;  %v546_v22 = vld [vmem:[%s790_s2 + $0x48] sm:$0xff]  ;;  %v547_v23 = vld [vmem:[%s790_s2 + $0x50] sm:$0xff]  ;;  %v548_v24 = vld [vmem:[%s790_s2 + $0x58] sm:$0xff] }
  0x14   : > { %569 = vmatprep.subr.mxu0 %v211_v7  ;;  %589 = vmatprep.subr.mxu1 %v211_v7 }
  0x15   : > { %570 = vmatpush3.msra.mxu0 %v211_v7  ;;  %597 = vmatpush3.msra.mxu1 %v211_v7 }
  0x16   : > { %571 = vmatprep.subr.mxu0 %v210_v8  ;;  %590 = vmatprep.subr.mxu1 %v210_v8 }
  0x17   : > { %572 = vmatpush3.msra.mxu0 %v210_v8  ;;  %598 = vmatpush3.msra.mxu1 %v210_v8 }
  0x18   : > { %573 = vmatprep.subr.mxu0 %v209_v9  ;;  %591 = vmatprep.subr.mxu1 %v209_v9 }
  0x19   : > { %574 = vmatpush3.msra.mxu0 %v209_v9  ;;  %599 = vmatpush3.msra.mxu1 %v209_v9 }
  0x1a   : > { %575 = vmatprep.subr.mxu0 %v208_v10  ;;  %592 = vmatprep.subr.mxu1 %v208_v10 }
  0x1b   : > { %576 = vmatpush3.msra.mxu0 %v208_v10  ;;  %600 = vmatpush3.msra.mxu1 %v208_v10 }
  0x1c   : > { %577 = vmatprep.subr.mxu0 %v207_v11  ;;  %593 = vmatprep.subr.mxu1 %v207_v11 }
  0x1d   : > { %578 = vmatpush3.msra.mxu0 %v207_v11  ;;  %601 = vmatpush3.msra.mxu1 %v207_v11 }
  0x1e   : > { %579 = vmatprep.subr.mxu0 %v206_v12  ;;  %594 = vmatprep.subr.mxu1 %v206_v12 }
  0x1f   : > { %580 = vmatpush3.msra.mxu0 %v206_v12  ;;  %602 = vmatpush3.msra.mxu1 %v206_v12 }
  0x20   : > { %582 = vmatmul.mubr.msk.f32.vlgmr.msra.gmra.mxu0 %vm238_vm0, %v203_v13  ;;  %585 = vmatmul.mubr.msk.f32.vlgmr.msra.gmra.mxu1 %vm238_vm0, %v205_v14 }
  0x21   : > { %225 = vperm.xlu0 %628, %v215_v15   ;;  %235 = vperm.xlu1 %629, %v217_v16  }
  0x25   : > { %390 = vperm.xlu0 %628, %v541_v17   ;;  %395 = vperm.xlu1 %629, %v542_v18  }
  0x29   : > { %400 = vperm.xlu0 %628, %v543_v19   ;;  %405 = vperm.xlu1 %629, %v544_v20  }
  0x2d   : > { %419 = vperm.xlu0 %628, %v545_v21   ;;  %424 = vperm.xlu1 %629, %v546_v22  }
  0x31   : > { %429 = vperm.xlu0 %628, %v547_v23   ;;  %434 = vperm.xlu1 %629, %v548_v24  }
  0x8a   : > { %v221_v25 = vpop.permute.xlu0 %220  ;;  %v231_v26 = vpop.permute.xlu1 %230 }
  0x9c   : > { %v226_v27 = vpop.permute.xlu0 %225  ;;  %v236_v33 = vpop.permute.xlu1 %235 }
  0xa0   : > { %v391_v9 = vpop.permute.xlu0 %390  ;;  %v396_v10 = vpop.permute.xlu1 %395 }
  0xa4   : > { %v401_v11 = vpop.permute.xlu0 %400  ;;  %v406_v12 = vpop.permute.xlu1 %405 }
  0xa8   : > { %v420_v13 = vpop.permute.xlu0 %419  ;;  %v425_v14 = vpop.permute.xlu1 %424 }
  0xe0   : > { %v583_v28 = vpop.f32.mrf.mxu0  ;;  %v586_v29 = vpop.f32.mrf.mxu1 }
  0xe1   : > { %v323_v30 = vadd.f32 %v583_v28, %v226_v27  ;;  %v333_v35 = vadd.f32 %v586_v29, %v236_v33  ;;  %v430_v28 = vpop.permute.xlu0 %429  ;;  %v435_v29 = vpop.permute.xlu1 %434 }
  0xe2   : > { %v317_v31 = vpop.f32.mrf.mxu0  ;;  %v327_v32 = vpop.f32.mrf.mxu1 }
  0xe3   : > { %v353_v34 = vmul.f32 %v323_v30, %v323_v30  ;;  %v318_v36 = vadd.f32 %v317_v31, %v221_v25  ;;  %v328_v37 = vadd.f32 %v327_v32, %v231_v26  ;;  %v338_v38 = vsel %vm336_vm1, %v323_v30, 0.0 }
  0xe4   : > { %v355_v44 = vmul.f32 %v333_v35, %v333_v35  ;;  %v342_v49 = vsel %vm336_vm1, %v333_v35, 0.0 }
  0xe5   : > { %v337_v39 = vsel %vm336_vm1, %v318_v36, 0.0  ;;  %v352_v40 = vmul.f32 %v318_v36, %v318_v36  ;;  %v354_v41 = vmul.f32 %v328_v37, %v328_v37  ;;  %v357_v43 = vsel %vm336_vm1, %v353_v34, 0.0 }
  0xe6   : > { %v339_v42 = vadd.f32 %v338_v38, %v337_v39  ;;  %v340_v46 = vsel %vm336_vm1, %v328_v37, 0.0  ;;  %v361_v53 = vsel %vm336_vm1, %v355_v44, 0.0 }
  0xe7   : > { %v356_v45 = vsel %vm336_vm1, %v352_v40, 0.0  ;;  %v359_v50 = vsel %vm336_vm1, %v354_v41, 0.0 }
  0xe8   : > { %v358_v47 = vadd.f32 %v357_v43, %v356_v45  ;;  %v341_v48 = vadd.f32 %v340_v46, %v339_v42 }
  0xea   : > { %v343_v51 = vadd.f32 %v342_v49, %v341_v48  ;;  %v360_v52 = vadd.f32 %v359_v50, %v358_v47 }
  0xec   : > { %v344_v54 = vrot.slane %v343_v51, 4  ;;  %v362_v55 = vadd.f32 %v361_v53, %v360_v52 }
  0xee   : > { %v345_v56 = vadd.f32 %v344_v54, %v343_v51  ;;  %v363_v57 = vrot.slane %v362_v55, 4 }
  0xf0   : > { %v346_v58 = vrot.slane %v345_v56, 2  ;;  %v364_v59 = vadd.f32 %v363_v57, %v362_v55 }
  0xf2   : > { %v347_v60 = vadd.f32 %v346_v58, %v345_v56  ;;  %v365_v61 = vrot.slane %v364_v59, 2 }
  0xf4   : > { %v348_v62 = vrot.slane %v347_v60, 1  ;;  %v366_v63 = vadd.f32 %v365_v61, %v364_v59 }
  0xf6   : > { %v349_v0 = vadd.f32 %v348_v62, %v347_v60  ;;  %v367_v1 = vrot.slane %v366_v63, 1 }
  0xf8   : > { %v351_v2 = vmul.f32 0.03125, %v349_v0  ;;  %v368_v3 = vadd.f32 %v367_v1, %v366_v63 }
  0xfa   : > { %v369_v4 = vmul.f32 0.03125, %v368_v3  ;;  %v370_v5 = vmul.f32 %v351_v2, %v351_v2  ;;  %v375_v15 = vsub.f32 %v318_v36, %v351_v2  ;;  %v376_v16 = vsub.f32 %v323_v30, %v351_v2 }
  0xfb   : > { %v377_v17 = vsub.f32 %v328_v37, %v351_v2  ;;  %v378_v18 = vsub.f32 %v333_v35, %v351_v2 }
  0xfc   : > { %v371_v6 = vsub.f32 %v369_v4, %v370_v5 }
  0xfe   : > { %v372_v7 = vmax.f32 %v371_v6, 0.0 }
 0x100   : > { %v373_v8 = vadd.f32 1e-05, %v372_v7 }
 0x102   : > { %630 = vrsqrt.f32 %v373_v8 }
 0x10f   : > { %v631_v19 = vpop.eup %630 }
 0x110   : > { %v379_v20 = vmul.f32 %v631_v19, %v375_v15  ;;  %v380_v21 = vmul.f32 %v631_v19, %v376_v16  ;;  %v381_v22 = vmul.f32 %v631_v19, %v377_v17  ;;  %v382_v23 = vmul.f32 %v631_v19, %v378_v18 }
 0x112   : > { %v408_v24 = vmul.f32 %v391_v9, %v379_v20  ;;  %v409_v25 = vmul.f32 %v396_v10, %v380_v21  ;;  %v410_v26 = vmul.f32 %v401_v11, %v381_v22  ;;  %v411_v27 = vmul.f32 %v406_v12, %v382_v23 }
 0x114   : > { %v437_v31 = vadd.f32 %v420_v13, %v408_v24  ;;  %v438_v30 = vadd.f32 %v425_v14, %v409_v25  ;;  %v439_v32 = vadd.f32 %v430_v28, %v410_v26  ;;  %v440_v33 = vadd.f32 %v435_v29, %v411_v27 }
 0x116   : > { %441 = vst.msk [vmem:[%s201_s5] sm:$0xff] %vm336_vm1, %v437_v31  ;;  %442 = vst.msk [vmem:[%s201_s5 + $0x8] sm:$0xff] %vm336_vm1, %v438_v30 }
 0x117   : > { %443 = vst.msk [vmem:[%s201_s5 + $0x10] sm:$0xff] %vm336_vm1, %v439_v32  ;;  %444 = vst.msk [vmem:[%s201_s5 + $0x18] sm:$0xff] %vm336_vm1, %v440_v33 }
 0x118 PF: > { %s13_s14 = sadd.s32 1, %s654_s14   ;;  %s792_s12 = smov %s650_s13 }
 0x119   : > { %p10_p5 = scmp.ge.s32.totalorder %s13_s14, 4   ;;  %s793_s13 = smov %s795_s15 }
 0x11b   :  { %12 = sbr.rel (!%p10_p5) target bundleno = 2 (0x2), region = 64 }

</bundles_post_ra>
